<compile_context>
chip_gen: v6e
topology: v6e:2x2x1
jax: 0.10.0
libtpu: 0.0.40
codegen_flags: <defaults>
</compile_context>

<pallas_src>
import math
import numpy as np
import jax
import jax.numpy as jnp
from jax.experimental import pallas as pl
from jax.experimental.pallas import tpu as pltpu

N_QUBITS = 8
N_LAYERS = 2          # QuantumLayer default n_layers
DIM = 2 ** N_QUBITS   # statevector dimension = 256


def _round_up(x, m):
    return ((x + m - 1) // m) * m


# ---------------------------------------------------------------------------
# Kernel A: feature_reducer (Linear -> ReLU -> Dropout(id) -> Linear -> Tanh)
# Transposed layout: all activations are (features, batch) -> lane-dense.
# ---------------------------------------------------------------------------
def angles_kernel(xT_ref, w1T_ref, b1_ref, w2T_ref, b2_ref, aT_ref):
    h = jnp.dot(w1T_ref[...], xT_ref[...],
                preferred_element_type=jnp.float32) + b1_ref[...]
    h = jnp.maximum(h, 0.0)
    a = jnp.dot(w2T_ref[...], h,
                preferred_element_type=jnp.float32) + b2_ref[...]
    aT_ref[...] = jnp.tanh(a)                                     # (8, tb)


# ---------------------------------------------------------------------------
# Kernel B: RY angle embedding (Kronecker-doubled product state) +
#           entangling unitary (single bf16 [Re;Im] MXU matmul) +
#           PauliZ readout + |.|^2 folded into the post_quantum MLP.
# ---------------------------------------------------------------------------
def quantum_kernel(scale_ref, aT_ref, ucatT_ref, zw3catT_ref, b3_ref,
                   w4T_ref, b4_ref, w5T_ref, b5_ref, outT_ref):
    a = aT_ref[...]                                   # (8, tb), tanh in (-1,1)
    half = a * (0.5 * scale_ref[0, 0])                # 0.5 * theta, lane-dense
    cos_h = jnp.cos(half)                             # (8, tb)
    sin_h = jnp.sin(half)

    # ---- RY product state |psi>^T of shape (256, tb); wire 0 = MSB --------
    # Seed over wires 5, 6, 7 (8 basis rows), select-free: amp = c + m*(s - c).
    row = jax.lax.broadcasted_iota(jnp.int32, (N_QUBITS, 1), 0)   # (8, 1)

    def amp(i, shift):
        m = ((row >> shift) & 1).astype(jnp.float32)              # (8, 1) 0/1
        c = cos_h[i:i + 1, :]
        s = sin_h[i:i + 1, :]
        return c + m * (s - c)                                    # (8, tb)

    psi = amp(5, 2) * amp(6, 1) * amp(7, 0)                       # (8, tb)
    # Kronecker doubling for wires 4..0 (all concats sublane-tile aligned).
    for i in (4, 3, 2, 1, 0):
        c = cos_h[i:i + 1, :]
        s = sin_h[i:i + 1, :]
        psi = jnp.concatenate([c * psi, s * psi], axis=0)
    # psi: (256, tb) float32

    # ---- StronglyEntanglingLayers as one bf16 MXU matmul: [Re(U);Im(U)]@psi
    ri = jnp.dot(ucatT_ref[...], psi.astype(jnp.bfloat16),
                 preferred_element_type=jnp.float32)              # (512, tb)
    sq = ri * ri                                                  # re^2 | im^2

    # ---- expval(PauliZ) + first Linear, folded: [zw3^T | zw3^T] @ (ri*ri) --
    h2 = jnp.dot(zw3catT_ref[...], sq,
                 preferred_element_type=jnp.float32) + b3_ref[...]
    h2 = jnp.maximum(h2, 0.0)
    h3 = jnp.dot(w4T_ref[...], h2,
                 preferred_element_type=jnp.float32) + b4_ref[...]
    h3 = jnp.maximum(h3, 0.0)
    outT_ref[...] = jnp.dot(w5T_ref[...], h3,
                            preferred_element_type=jnp.float32) + b5_ref[...]


# ---------------------------------------------------------------------------
# Wrapper: batch-tiled grid over two pallas_calls (global-max scale between).
# ---------------------------------------------------------------------------
def _const_spec(arr):
    nd = arr.ndim
    return pl.BlockSpec(arr.shape, lambda i, _nd=nd: (0,) * _nd)


def physics_informed_qnn(x, params, max_tile_b=512):
    B, input_dim = x.shape
    hidden_dim = params["w1T"].shape[0]

    # Batch tile = lane (minor) dim of every block: multiple of 128 when the
    # batch spans several tiles, otherwise the whole (8-padded) batch.
    if B >= max_tile_b:
        tb = max_tile_b                      # multiple of 128
    else:
        tb = _round_up(max(B, 8), 8)
    b_pad = _round_up(B, tb)
    nb = b_pad // tb

    x_p = jnp.pad(x, ((0, b_pad - B), (0, 0))) if b_pad != B else x
    xT = x_p.T                               # (input_dim, b_pad) lane-dense batch

    parallel = pltpu.CompilerParams(dimension_semantics=("parallel",))
    # TODO(synk): on v7x, evaluate pltpu.CORE_PARALLEL for the batch axis;
    # "parallel" is the documented megacore semantic and a no-op on v5e/v6e.

    # ---- pass 1: feature_reducer -> angles (8, b_pad) -------------------------
    cost_a = pl.CostEstimate(
        flops=2 * b_pad * (input_dim * hidden_dim + hidden_dim * N_QUBITS),
        transcendentals=b_pad * N_QUBITS,
        bytes_accessed=4 * (b_pad * input_dim + b_pad * N_QUBITS
                            + input_dim * hidden_dim + hidden_dim
                            + hidden_dim * N_QUBITS + N_QUBITS))
    aT = pl.pallas_call(
        angles_kernel,
        out_shape=jax.ShapeDtypeStruct((N_QUBITS, b_pad), jnp.float32),
        grid=(nb,),
        in_specs=[pl.BlockSpec((input_dim, tb), lambda i: (0, i)),
                  _const_spec(params["w1T"]), _const_spec(params["b1c"]),
                  _const_spec(params["w2T"]), _const_spec(params["b2c"])],
        out_specs=pl.BlockSpec((N_QUBITS, tb), lambda i: (0, i)),
        compiler_params=parallel,
        cost_estimate=cost_a,
    )(xT, params["w1T"], params["b1c"], params["w2T"], params["b2c"])

    # ---- global-max normalization scale (whole-batch torch.max semantics) ----
    # tanh output is already in (-1, 1): the original clamp(-10, 10) is a no-op.
    m = jnp.max(jnp.abs(aT[:, :B]))
    scale = jnp.where(m > 0.0, jnp.pi / jnp.maximum(m, 1e-30), 1.0)
    scale = scale.reshape(1, 1).astype(jnp.float32)

    # ---- pass 2: quantum layer + post_quantum MLP -----------------------------
    cost_b = pl.CostEstimate(
        flops=2 * b_pad * (DIM * 2 * DIM + 2 * DIM * hidden_dim
                           + hidden_dim * 32 + 32) + b_pad * 640,
        transcendentals=2 * b_pad * N_QUBITS,
        bytes_accessed=(4 * (b_pad * N_QUBITS + b_pad + 1)
                        + 2 * (2 * DIM * DIM)
                        + 4 * (2 * DIM * hidden_dim + hidden_dim
                               + hidden_dim * 32 + 32 + 32 + 1)))
    outT = pl.pallas_call(
        quantum_kernel,
        out_shape=jax.ShapeDtypeStruct((1, b_pad), jnp.float32),
        grid=(nb,),
        in_specs=[pl.BlockSpec(memory_space=pltpu.MemorySpace.SMEM),   # scale (1,1)
                  pl.BlockSpec((N_QUBITS, tb), lambda i: (0, i)),      # angles
                  _const_spec(params["ucatT"]), _const_spec(params["zw3catT"]),
                  _const_spec(params["b3c"]),
                  _const_spec(params["w4T"]), _const_spec(params["b4c"]),
                  _const_spec(params["w5T"]), _const_spec(params["b5c"])],
        out_specs=pl.BlockSpec((1, tb), lambda i: (0, i)),
        compiler_params=parallel,
        cost_estimate=cost_b,
    )(scale, aT, params["ucatT"], params["zw3catT"], params["b3c"],
      params["w4T"], params["b4c"], params["w5T"], params["b5c"])

    return outT[0, :B].reshape(B, 1)


# ---------------------------------------------------------------------------
# Parameter setup (plain NumPy / JAX glue).
# ---------------------------------------------------------------------------
def _build_entangling_unitary(qweights):
    """Compile StronglyEntanglingLayers(weights) into one 256x256 unitary."""
    qw = np.asarray(qweights, dtype=np.float64)

    def rz(a):
        return np.array([[np.exp(-0.5j * a), 0.0],
                         [0.0, np.exp(0.5j * a)]], dtype=np.complex128)

    def ry(t):
        c, s = np.cos(0.5 * t), np.sin(0.5 * t)
        return np.array([[c, -s], [s, c]], dtype=np.complex128)

    def rot(phi, theta, omega):
        # PennyLane Rot(phi, theta, omega) = RZ(omega) RY(theta) RZ(phi)
        return rz(omega) @ ry(theta) @ rz(phi)

    def kron_wires(gates):
        U = np.array([[1.0 + 0.0j]], dtype=np.complex128)
        for g in gates:               # wire 0 is most-significant -> leftmost
            U = np.kron(U, g)
        return U

    def cnot(control, target):
        idx = np.arange(DIM)
        cbit = (idx >> (N_QUBITS - 1 - control)) & 1
        flipped = idx ^ (cbit << (N_QUBITS - 1 - target))
        return np.eye(DIM, dtype=np.complex128)[flipped]

    U = np.eye(DIM, dtype=np.complex128)
    ranges = [(l % (N_QUBITS - 1)) + 1 for l in range(N_LAYERS)]
    for l in range(N_LAYERS):
        U = kron_wires([rot(*qw[l, i]) for i in range(N_QUBITS)]) @ U
        r = ranges[l]
        for i in range(N_QUBITS):
            U = cnot(i, (i + r) % N_QUBITS) @ U
    return U


def init_params(key, input_dim, hidden_dim):
    ks = jax.random.split(key, 6)

    def xavier(k, fan_in, fan_out):
        bound = math.sqrt(6.0 / (fan_in + fan_out))
        return jax.random.uniform(k, (fan_in, fan_out), jnp.float32,
                                  minval=-bound, maxval=bound)

    p = {}
    # reference-orientation weights (ground truth for validation)
    p["w1"] = xavier(ks[0], input_dim, hidden_dim)
    p["b1"] = jnp.zeros((1, hidden_dim), jnp.float32)
    p["w2"] = xavier(ks[1], hidden_dim, N_QUBITS)
    p["b2"] = jnp.zeros((1, N_QUBITS), jnp.float32)
    p["w3"] = xavier(ks[2], N_QUBITS, hidden_dim)
    p["b3"] = jnp.zeros((1, hidden_dim), jnp.float32)
    p["w4"] = xavier(ks[3], hidden_dim, 32)
    p["b4"] = jnp.zeros((1, 32), jnp.float32)
    p["w5"] = xavier(ks[4], 32, 1)
    p["b5"] = jnp.zeros((1, 1), jnp.float32)

    # quantum weights (TorchLayer default init: uniform in [0, 2*pi))
    qweights = jax.random.uniform(ks[5], (N_LAYERS, N_QUBITS, 3), jnp.float32,
                                  minval=0.0, maxval=2.0 * math.pi)
    U = _build_entangling_unitary(np.asarray(qweights))

    # basis-state tables (wire 0 = most-significant bit)
    idx = np.arange(DIM)
    bits = np.stack([((idx >> (N_QUBITS - 1 - i)) & 1) for i in range(N_QUBITS)],
                    axis=0).astype(np.float64)                    # (8, 256)
    zsign = (1.0 - 2.0 * bits).T                                  # (256, 8) f64

    # ---- kernel-side constants (transposed, feature-major layout) ----------
    p["w1T"] = p["w1"].T
    p["b1c"] = jnp.zeros((hidden_dim, 1), jnp.float32)
    p["w2T"] = p["w2"].T
    p["b2c"] = jnp.zeros((N_QUBITS, 1), jnp.float32)
    p["w4T"] = p["w4"].T
    p["b4c"] = jnp.zeros((32, 1), jnp.float32)
    p["w5T"] = p["w5"].T
    p["b5c"] = jnp.zeros((1, 1), jnp.float32)

    # entangling unitary stacked row-wise [Re(U); Im(U)], bf16 for native MXU
    ucatT = np.concatenate([np.ascontiguousarray(U.real),
                            np.ascontiguousarray(U.imag)], axis=0)  # (512, 256)
    p["ucatT"] = jnp.asarray(ucatT, dtype=jnp.bfloat16)

    # PauliZ readout folded into the first post_quantum Linear AND the
    # re^2 + im^2 reduction folded into the same matmul (exact, in float64):
    #   probs @ zsign @ w3  ==  [zw3^T | zw3^T] @ (ri * ri)   (transposed form)
    zw3 = zsign @ np.asarray(p["w3"], np.float64)                  # (256, hidden)
    zw3catT = np.concatenate([zw3.T, zw3.T], axis=1)               # (hidden, 512)
    p["zw3catT"] = jnp.asarray(zw3catT, dtype=jnp.float32)
    p["b3c"] = jnp.zeros((hidden_dim, 1), jnp.float32)

    # ---- reference-only constants (full float32 precision) -----------------
    p["bits"] = jnp.asarray(bits, dtype=jnp.float32)               # (8, 256)
    p["zsign"] = jnp.asarray(zsign, dtype=jnp.float32)             # (256, 8)
    p["u_reT"] = jnp.asarray(np.ascontiguousarray(U.T.real), jnp.float32)
    p["u_imT"] = jnp.asarray(np.ascontiguousarray(U.T.imag), jnp.float32)
    return p


# ---------------------------------------------------------------------------
# Pure-JAX reference (original un-fused structure, f32/HIGHEST) for validation.
# ---------------------------------------------------------------------------
def reference_forward(x, params):
    hp = jax.lax.Precision.HIGHEST
    h = jnp.maximum(jnp.dot(x, params["w1"], precision=hp) + params["b1"], 0.0)
    a = jnp.tanh(jnp.dot(h, params["w2"], precision=hp) + params["b2"])
    a_c = jnp.clip(a, -10.0, 10.0)
    m = jnp.max(jnp.abs(a_c))
    theta = jnp.where(m > 0.0, a_c / jnp.maximum(m, 1e-30) * jnp.pi, a_c)
    half = 0.5 * theta
    cos_h, sin_h = jnp.cos(half), jnp.sin(half)
    bits = params["bits"]
    psi = jnp.ones((x.shape[0], DIM), jnp.float32)
    for i in range(N_QUBITS):
        bi = bits[i][None, :]
        psi = psi * (cos_h[:, i:i + 1] * (1.0 - bi) + sin_h[:, i:i + 1] * bi)
    out_re = jnp.dot(psi, params["u_reT"], precision=hp)
    out_im = jnp.dot(psi, params["u_imT"], precision=hp)
    probs = out_re * out_re + out_im * out_im
    expz = jnp.dot(probs, params["zsign"], precision=hp)
    h2 = jnp.maximum(jnp.dot(expz, params["w3"], precision=hp) + params["b3"], 0.0)
    h3 = jnp.maximum(jnp.dot(h2, params["w4"], precision=hp) + params["b4"], 0.0)
    return jnp.dot(h3, params["w5"], precision=hp) + params["b5"]


if __name__ == "__main__":
    key = jax.random.PRNGKey(0)
    k_x, k_p = jax.random.split(key)

    B, INPUT_DIM, HIDDEN_DIM = 8, 16, 32
    x = jax.random.normal(k_x, (B, INPUT_DIM), dtype=jnp.float32)
    params = init_params(k_p, INPUT_DIM, HIDDEN_DIM)

    out = jax.block_until_ready(physics_informed_qnn(x, params))
    assert out.shape == (B, 1) and out.dtype == jnp.float32

    ref = jax.block_until_ready(reference_forward(x, params))
    err = float(jnp.max(jnp.abs(out - ref)))
    assert err < 1e-2, f"kernel vs reference mismatch: max abs err = {err}"
    print("KERNEL_OK")
</pallas_src>

<mosaic_0001>
module attributes {stable_mosaic.version = 11 : i64} {
  func.func @angles_kernel(%arg0: i32, %arg1: memref<16x8xf32, #tpu.memory_space<vmem>>, %arg2: memref<32x16xf32, #tpu.memory_space<vmem>>, %arg3: memref<32x1xf32, #tpu.memory_space<vmem>>, %arg4: memref<8x32xf32, #tpu.memory_space<vmem>>, %arg5: memref<8x1xf32, #tpu.memory_space<vmem>>, %arg6: memref<8x8xf32, #tpu.memory_space<vmem>>) attributes {dimension_semantics = [#tpu.dimension_semantics<parallel>], iteration_bounds = array<i64: 1>, scalar_prefetch = 0 : i64, scratch_operands = 0 : i64, tpu.core_type = #tpu.core_type<tc>, window_params = [{transform_indices = @transform_0, window_bounds = array<i64: 16, 8>}, {pipeline_mode = #tpu.pipeline_mode<synchronous>, transform_indices = @transform_1, window_bounds = array<i64: 32, 16>}, {pipeline_mode = #tpu.pipeline_mode<synchronous>, transform_indices = @transform_2, window_bounds = array<i64: 32, 1>}, {pipeline_mode = #tpu.pipeline_mode<synchronous>, transform_indices = @transform_3, window_bounds = array<i64: 8, 32>}, {pipeline_mode = #tpu.pipeline_mode<synchronous>, transform_indices = @transform_4, window_bounds = array<i64: 8, 1>}, {transform_indices = @transform_5, window_bounds = array<i64: 8, 8>}]} {
    %c0 = arith.constant 0 : index
    %c0_0 = arith.constant 0 : index
    %0 = vector.load %arg2[%c0, %c0_0] : memref<32x16xf32, #tpu.memory_space<vmem>>, vector<32x16xf32>
    %c0_1 = arith.constant 0 : index
    %c0_2 = arith.constant 0 : index
    %1 = vector.load %arg1[%c0_1, %c0_2] : memref<16x8xf32, #tpu.memory_space<vmem>>, vector<16x8xf32>
    %cst = arith.constant dense<0.000000e+00> : vector<32x8xf32>
    %2 = tpu.matmul %0, %1, %cst {dimension_numbers = #tpu.dot_dimension_numbers<[1], [0], [0], [1], [0, 0, 1, 1], [], []>} : vector<32x16xf32>, vector<16x8xf32>, vector<32x8xf32> -> vector<32x8xf32>
    %c0_3 = arith.constant 0 : index
    %c0_4 = arith.constant 0 : index
    %3 = vector.load %arg3[%c0_3, %c0_4] : memref<32x1xf32, #tpu.memory_space<vmem>>, vector<32x1xf32>
    %4 = vector.broadcast %3 : vector<32x1xf32> to vector<32x8xf32>
    %5 = arith.addf %2, %4 : vector<32x8xf32>
    %cst_5 = arith.constant 0.000000e+00 : f32
    %6 = vector.broadcast %cst_5 : f32 to vector<32x8xf32>
    %7 = arith.maximumf %5, %6 : vector<32x8xf32>
    %c0_6 = arith.constant 0 : index
    %c0_7 = arith.constant 0 : index
    %8 = vector.load %arg4[%c0_6, %c0_7] : memref<8x32xf32, #tpu.memory_space<vmem>>, vector<8x32xf32>
    %cst_8 = arith.constant dense<0.000000e+00> : vector<8x8xf32>
    %9 = tpu.matmul %8, %7, %cst_8 {dimension_numbers = #tpu.dot_dimension_numbers<[1], [0], [0], [1], [0, 0, 1, 1], [], []>} : vector<8x32xf32>, vector<32x8xf32>, vector<8x8xf32> -> vector<8x8xf32>
    %c0_9 = arith.constant 0 : index
    %c0_10 = arith.constant 0 : index
    %10 = vector.load %arg5[%c0_9, %c0_10] : memref<8x1xf32, #tpu.memory_space<vmem>>, vector<8x1xf32>
    %11 = vector.broadcast %10 : vector<8x1xf32> to vector<8x8xf32>
    %12 = arith.addf %9, %11 : vector<8x8xf32>
    %13 = math.tanh %12 : vector<8x8xf32>
    %c0_11 = arith.constant 0 : index
    %c0_12 = arith.constant 0 : index
    %14 = vector.load %arg6[%c0_11, %c0_12] : memref<8x8xf32, #tpu.memory_space<vmem>>, vector<8x8xf32>
    tpu.vector_store %arg6[%c0_11, %c0_12], %13 {strides = array<i32>} : memref<8x8xf32, #tpu.memory_space<vmem>>, vector<8x8xf32>,
    return
  }
  func.func @transform_0(%arg0: i32) -> (i32, i32) {
    %c0_i32 = arith.constant 0 : i32
    %c0_i32_0 = arith.constant 0 : i32
    return %c0_i32, %arg0 : i32, i32
  }
  func.func @transform_1(%arg0: i32) -> (i32, i32) {
    %c0_i32 = arith.constant 0 : i32
    %c0_i32_0 = arith.constant 0 : i32
    %c0_i32_1 = arith.constant 0 : i32
    return %c0_i32, %c0_i32_0 : i32, i32
  }
  func.func @transform_2(%arg0: i32) -> (i32, i32) {
    %c0_i32 = arith.constant 0 : i32
    %c0_i32_0 = arith.constant 0 : i32
    %c0_i32_1 = arith.constant 0 : i32
    return %c0_i32, %c0_i32_0 : i32, i32
  }
  func.func @transform_3(%arg0: i32) -> (i32, i32) {
    %c0_i32 = arith.constant 0 : i32
    %c0_i32_0 = arith.constant 0 : i32
    %c0_i32_1 = arith.constant 0 : i32
    return %c0_i32, %c0_i32_0 : i32, i32
  }
  func.func @transform_4(%arg0: i32) -> (i32, i32) {
    %c0_i32 = arith.constant 0 : i32
    %c0_i32_0 = arith.constant 0 : i32
    %c0_i32_1 = arith.constant 0 : i32
    return %c0_i32, %c0_i32_0 : i32, i32
  }
  func.func @transform_5(%arg0: i32) -> (i32, i32) {
    %c0_i32 = arith.constant 0 : i32
    %c0_i32_0 = arith.constant 0 : i32
    return %c0_i32, %arg0 : i32, i32
  }
}

</mosaic_0001>

<bundles_post_ra>
// kernel: tpu_custom_call.1
= control target key start
LH: loop header
LB: loop body
LE: loop exit
PB: predicated region body
PF: predicated region fallthrough
CT: control target
= control target key end

     0   :  { %vm51_vm0 = vcmask 130048   ;;  %v318_v4 = vmov 0   ;;  %s395_s0 = inlined_call_operand.vmem [shape: f32[16,8], index: 0, kind: input, shape index: {}]   ;;  %s396_s1 = inlined_call_operand.vmem [shape: f32[32,16], index: 1, kind: input, shape index: {}]   ;;  %s397_s2 = inlined_call_operand.vmem [shape: f32[32,1], index: 2, kind: input, shape index: {}]   ;;  %s398_s3 = inlined_call_operand.vmem [shape: f32[8,32], index: 3, kind: input, shape index: {}]   ;;  %s399_s4 = inlined_call_operand.vmem [shape: f32[8,1], index: 4, kind: input, shape index: {}]   ;;  %s400_s5 = inlined_call_operand.hbm [shape: f32[8,8], index: 5, kind: output, shape index: {}]  }
   0x1   :  { %v26_v0 = vld [vmem:[%s395_s0 + $0x8] sm:$0xff]  ;;  %v25_v1 = vld [vmem:[%s395_s0] sm:$0xff]  ;;  %292 = vset.pattern.permute.xlu0 %v318_v4  ;;  %v30_v5 = vld [vmem:[%s397_s2 + $0x18] sm:$0xff] }
   0x2   :  { %v21_v2 = vld [vmem:[%s396_s1] sm:$0xff]  ;;  %267 = vmatprep.subr.mxu0 %v26_v0  ;;  %v22_v3 = vld [vmem:[%s396_s1 + $0x8] sm:$0xff]  ;;  %v23_v7 = vld [vmem:[%s396_s1 + $0x10] sm:$0xff]  ;;  %48 = vperm.xlu0 %292, %v30_v5  }
   0x3   :  { %271 = vmatprep.mubr.msk.f32.mxu0 %vm51_vm0, %v21_v2  ;;  %268 = vmatpush3.msra.mxu0 %v26_v0  ;;  %v28_v6 = vld [vmem:[%s397_s2 + $0x8] sm:$0xff] }
   0x4   :  { %269 = vmatprep.subr.mxu0 %v25_v1 }
   0x5   :  { %10 = vsyncpa [#allocation3], 0  ;;  %270 = vmatpush3.msra.mxu0 %v25_v1  ;;  %293 = vset.pattern.permute.xlu1 %v318_v4  ;;  %v29_v8 = vld [vmem:[%s397_s2 + $0x10] sm:$0xff]  ;;  %v24_v9 = vld [vmem:[%s396_s1 + $0x18] sm:$0xff]  ;;  %v319_v12 = vmov 0.0   ;;  %vm320_vm1 = vmmov 0  }
   0x6   :  { %272 = vmatmul.mubr.msk.f32.vlgmr.msra.gmra.mxu0 %vm51_vm0, %v22_v3  ;;  %38 = vperm.xlu1 %293, %v28_v6   ;;  %v27_v10 = vld [vmem:[%s397_s2] sm:$0xff]  ;;  %vm160_vm2 = vcmask 261120   ;;  %vm235_vm3 = vcmask 64512  }
   0x7   :  { %274 = vmatprep.mubr.msk.f32.mxu0 %vm51_vm0, %v23_v7  ;;  %43 = vperm.xlu0 %292, %v29_v8   ;;  %v154_v11 = vld [vmem:[%s399_s4] sm:$0xff]  ;;  %s321_s4 = smov [#allocation2]  }
   0x8   :  { %277 = vmatprep.subr.mxu1 %v319_v12  ;;  %285 = vmatprep.mubr.msk.f32.mxu1 %vm320_vm1, %v319_v12  ;;  %v153_v29 = vld [vmem:[%s398_s3] sm:$0xff]  ;;  %s243_s14 = sshll.u32 %s321_s4, 4  ;;  %s244_s14 = int_to_ptr.vmem [resolvable:$true] %s243_s14 }
   0x9   :  { %s296_s15 = scalar_lea.vmem %s244_s14, 128  ;;  %p301_p1 = scmp.lt.s32.totalorder %s244_s14, %s244_s14 }
   0xa   :  { %275 = vmatmul.mubr.msk.f32.gmra.mxu0 %vm51_vm0, %v24_v9  ;;  %33 = vperm.xlu1 %293, %v27_v10   ;;  %p297_p0 = scmp.ne.s32.totalorder %s244_s14, %s296_s15  ;;  %p302_p2 = scmp.lt.s32.totalorder %s296_s15, %s296_s15 }
   0xb   :  { %157 = vperm.xlu0 %292, %v154_v11  }
   0xc   :  { %p303_p3 = por %p302_p2, %p301_p1 }
   0xe   :  { %p304_p4 = pnand %p303_p3, %p297_p0 }
  0x7d   :  { %v49_v13 = vpop.permute.xlu0 %48 }
  0x81   :  { %v39_v14 = vpop.permute.xlu1 %38 }
  0x82   :  { %v44_v18 = vpop.permute.xlu0 %43 }
  0x85   :  { %v34_v20 = vpop.permute.xlu1 %33 }
  0x86   :  { %v158_v30 = vpop.permute.xlu0 %157 }
  0xc6   :  { %v273_v15 = vpop.f32.mrf.mxu0 }
  0xc7   :  { %v136_v22 = vadd.f32 %v273_v15, %v39_v14 }
  0xc8   :  { %v130_v16 = vpop.f32.mrf.mxu0 }
  0xc9   :  { %v131_v25 = vadd.f32 %v130_v16, %v34_v20  ;;  %v150_v27 = vmax.f32 %v136_v22, 0.0 }
  0xca   :  { %v276_v17 = vpop.f32.mrf.mxu0 }
  0xcb   :  { %v146_v19 = vadd.f32 %v276_v17, %v49_v13  ;;  %v149_v28 = vmax.f32 %v131_v25, 0.0 }
  0xcc   :  { %v140_v21 = vpop.f32.mrf.mxu0 }
  0xcd   :  { %v152_v23 = vmax.f32 %v146_v19, 0.0  ;;  %v141_v24 = vadd.f32 %v140_v21, %v44_v18 }
  0xcf   :  { %v151_v26 = vmax.f32 %v141_v24, 0.0  ;;  %278 = vmatpush3.msra.mxu1 %v152_v23 }
  0xd0   :  { %279 = vmatprep.subr.mxu1 %v319_v12 }
  0xd1   :  { %280 = vmatpush3.msra.mxu1 %v151_v26 }
  0xd2   :  { %281 = vmatprep.subr.mxu1 %v319_v12 }
  0xd3   :  { %282 = vmatpush3.msra.mxu1 %v150_v27 }
  0xd4   :  { %283 = vmatprep.subr.mxu1 %v319_v12 }
  0xd5   :  { %284 = vmatpush3.msra.mxu1 %v149_v28 }
  0xd6   :  { %286 = vmatmul.mubr.msk.f32.vlgmr.msra.gmra.mxu1 %vm160_vm2, %v153_v29 }
 0x196   :  { %v230_v31 = vpop.f32.mrf.mxu1 }
 0x197   :  { %v231_v32 = vadd.f32 %v230_v31, %v158_v30 }
 0x198   :  { %v287_v33 = vpop.f32.mrf.mxu1 }
 0x199   :  { %294 = vtanh.f32 %v231_v32 }
 0x1a6   :  { %v295_v34 = vpop.eup %294 }
 0x1a7   :  { %236 = vst.msk [vmem:[#allocation2] sm:$0xff] %vm235_vm3, %v295_v34 }
 0x1a8   :  { %307 = shalt.err (!%p304_p4)
}
 0x1a9   :  { %246 = dma.vmem_to_hbm [thread:$0]  %s244_s14, 128, %s400_s5, [#allocation3]  }
 0x1aa   :  { %316 = dma.done.wait [#allocation3], 128  }
 0x1ab   :  { %317 = vsyncadd [#allocation3], 4294967168 }
 0x1ac   :  { %250 = vsyncpa [#allocation3], 1 }

</bundles_post_ra>
